<compile_context>
chip_gen: v6e
topology: v6e:2x2x1
jax: 0.10.0
libtpu: 0.0.40
codegen_flags: <defaults>
</compile_context>

<pallas_src>
import jax
import jax.numpy as jnp
from jax.experimental import pallas as pl
from jax.experimental.pallas import tpu as pltpu

LANE = 128


def _round_up(x, m):
    return ((x + m - 1) // m) * m


def _mxu_rows():
    """Rows to fill one MXU push: 128 on v5e, 256 on v6e/v7x."""
    try:
        kind = jax.devices()[0].device_kind.lower()
        if "v5 lite" in kind or "v5e" in kind or "v5lite" in kind:
            return 128
    except Exception:
        pass
    return 256


def _pick_bblk(B, N, target_rows):
    """Smallest divisor of B with Bblk*N >= target_rows; else the whole batch."""
    want = max(1, -(-target_rows // N))
    for d in range(want, B):
        if B % d == 0:
            return d
    return B


def make_gcn_kernel(step_num):
    """Fused GCN forward over one (Bblk, N, ...) group of batch blocks."""

    def kernel(feat_ref, adj_ref, *rest):
        # rest = (W_0, ..., W_{step_num-1}, Wout, out_ref); weights are (in, out).
        w_refs = rest[:step_num]
        wout_ref = rest[step_num]
        out_ref = rest[step_num + 1]

        bblk, n, din = feat_ref.shape
        hpad, opad = wout_ref.shape

        feat = feat_ref[...]                                    # (Bblk, N, Din) f32
        adj = adj_ref[...]                                      # (Bblk, N, N)  f32

        # ---- avg pooling folded into the adjacency (once per block):
        #   adj_n[b,i,j] = adj[b,i,j] / sum_j adj[b,i,j] * [||feat[b,j]|| > 0]
        norm2 = jnp.sum(feat * feat, axis=-1)                   # (Bblk, N)
        nz = (norm2 > 0.0).astype(jnp.float32)                  # (Bblk, N)
        row_sum = jnp.sum(adj * nz[:, None, :], axis=-1, keepdims=True)  # (Bblk,N,1)
        row_sum = jnp.where(row_sum == 0.0, 1.0, row_sum)
        adj_n = adj * pl.reciprocal(row_sum, approx=False)      # exact (1e-4 tol)

        # ---- propagation: X <- relu(adj_n @ (X W_k))
        # x@W uses the flat (Bblk*N, .) operand (big M for the MXU); adj_n@Z is
        # a batched einsum.  The last step only needs row 0 of each block (the
        # target node), cutting that aggregation + projection by a factor of N.
        x = feat.reshape(bblk * n, din)
        for k, w_ref in enumerate(w_refs):
            z = jnp.dot(x, w_ref[...], preferred_element_type=jnp.float32)
            z3 = z.reshape(bblk, n, hpad)
            if k == step_num - 1:
                agg = jnp.einsum('bij,bjh->bih', adj_n[:, 0:1, :], z3,
                                 preferred_element_type=jnp.float32)  # (Bblk,1,H)
                x = jnp.maximum(agg, 0.0).reshape(bblk, hpad)
            else:
                agg = jnp.einsum('bij,bjh->bih', adj_n, z3,
                                 preferred_element_type=jnp.float32)  # (Bblk,N,H)
                x = jnp.maximum(agg, 0.0).reshape(bblk * n, hpad)

        # ---- output projection; one lane-dense store per grid step.
        out2 = jnp.dot(x, wout_ref[...], preferred_element_type=jnp.float32)
        out_ref[...] = out2.reshape(bblk, 1, opad)

    return kernel


def gcn_forward(feat, raw_adj, Ws, Wout):
    """feat: (B*N, Din); raw_adj: (B, N, N); Ws: list of (out, in); Wout: (out, in)."""
    B, N = raw_adj.shape[0], raw_adj.shape[1]
    Din = feat.shape[1]
    out_dim = Wout.shape[0]
    step_num = len(Ws)
    H = Ws[0].shape[0]

    Hpad = _round_up(H, LANE)
    Opad = _round_up(out_dim, LANE)

    feat3 = feat.reshape(B, N, Din).astype(jnp.float32)
    adj_f = raw_adj.astype(jnp.float32)

    def pad2d(w, rows, cols):
        return jnp.zeros((rows, cols), jnp.float32).at[
            :w.shape[0], :w.shape[1]].set(w.astype(jnp.float32))

    # nn.Linear stores (out, in); kernel wants (in, out).  Zero-padding keeps
    # the padded hidden/output lanes exactly zero through relu & projection.
    ws_t = []
    for i, w in enumerate(Ws):
        in_rows = Din if i == 0 else Hpad
        ws_t.append(pad2d(w.T, in_rows, Hpad))
    wout_t = pad2d(Wout.T, Hpad, Opad)                          # (Hpad, Opad)

    # Batch Bblk adjacency blocks per grid step so the x@W matmuls present
    # >=128 (v5e) / >=256 (v6e/v7x) rows to the MXU and the ~600-cycle fixed
    # per-grid-step overhead is amortized.  At small B (e.g. B=2) this takes
    # the whole problem in a single invocation.
    Bblk = _pick_bblk(B, N, _mxu_rows())
    grid = (B // Bblk,)

    in_specs = (
        [pl.BlockSpec((Bblk, N, Din), lambda g: (g, 0, 0)),     # feature blocks
         pl.BlockSpec((Bblk, N, N), lambda g: (g, 0, 0))]       # adjacency blocks
        + [pl.BlockSpec(w.shape, lambda g: (0, 0)) for w in ws_t]
        + [pl.BlockSpec(wout_t.shape, lambda g: (0, 0))]
    )
    out_spec = pl.BlockSpec((Bblk, 1, Opad), lambda g: (g, 0, 0))

    # Per-step VMEM: Bblk*(N*Din + N*N) inputs + weights + (Bblk*N, Hpad)
    # activations -- far under the scoped limit on v5e/v6e and v7x's 64 MiB.
    # (If H/N ever grow, ship weights as bf16 / pl.Buffered(1) before v7x's
    #  smaller VMEM becomes the binding resource.)
    out_pad = pl.pallas_call(
        make_gcn_kernel(step_num),
        grid=grid,
        in_specs=in_specs,
        out_specs=out_spec,
        out_shape=jax.ShapeDtypeStruct((B, 1, Opad), jnp.float32),
        compiler_params=pltpu.CompilerParams(
            dimension_semantics=("parallel",)),  # shard batch groups across TCs
    )(feat3, adj_f, *ws_t, wout_t)

    # Target rows [0, N, 2N, ...] were already selected in-kernel (row 0 of
    # each block), matching the reference's ids = arange(B)*N convention.
    return out_pad[:, 0, :out_dim]


def gcn_ref(feat, raw_adj, Ws, Wout):
    """Pure-JAX reference mirroring the PyTorch forward (model_name='gcn')."""
    adj = jax.scipy.linalg.block_diag(*raw_adj)
    norm = jnp.linalg.norm(feat, axis=1)
    mask = (norm > 0).astype(feat.dtype)
    row_sum = jnp.sum(adj * mask[None, :], axis=1)
    row_sum = jnp.where(row_sum == 0, 1.0, row_sum)
    adj = adj / row_sum[:, None]
    x = feat
    for w in Ws:
        x = jnp.maximum(adj @ (x @ w.T), 0.0)
    x = x @ Wout.T
    ids = jnp.arange(raw_adj.shape[0]) * raw_adj.shape[1]
    return x[ids]


def xavier_uniform(key, out_dim, in_dim):
    bound = (6.0 / (in_dim + out_dim)) ** 0.5
    return jax.random.uniform(key, (out_dim, in_dim), jnp.float32, -bound, bound)


if __name__ == "__main__":
    # Small shapes consistent with the module's forward.
    batch_num, node_num = 2, 8
    input_dim, hidden_dim, output_dim, step_num = 8, 32, 4, 2

    key = jax.random.PRNGKey(0)
    k_feat, k_adj, k_w0, k_w1, k_out = jax.random.split(key, 5)

    feat = jax.random.normal(k_feat, (batch_num * node_num, input_dim), jnp.float32)
    # Random binary adjacency with self loops.
    raw_adj = (jax.random.uniform(k_adj, (batch_num, node_num, node_num)) > 0.5
               ).astype(jnp.float32)
    eye = jnp.eye(node_num, dtype=jnp.float32)[None]
    raw_adj = jnp.clip(raw_adj + eye, 0.0, 1.0)

    # Deterministic xavier-uniform weights (nn.Linear stores (out, in)).
    Ws = [xavier_uniform(k_w0, hidden_dim, input_dim),
          xavier_uniform(k_w1, hidden_dim, hidden_dim)]
    assert len(Ws) == step_num
    Wout = xavier_uniform(k_out, output_dim, hidden_dim)

    out = gcn_forward(feat, raw_adj, Ws, Wout)
    out = jax.block_until_ready(out)

    ref = gcn_ref(feat, raw_adj, Ws, Wout)
    assert out.shape == (batch_num, output_dim)
    assert jnp.allclose(out, ref, atol=1e-4, rtol=1e-4), (out, ref)

    print("KERNEL_OK")
</pallas_src>

<mosaic_0001>
module attributes {stable_mosaic.version = 11 : i64} {
  func.func @kernel(%arg0: i32, %arg1: memref<2x8x8xf32, #tpu.memory_space<vmem>>, %arg2: memref<2x8x8xf32, #tpu.memory_space<vmem>>, %arg3: memref<8x128xf32, #tpu.memory_space<vmem>>, %arg4: memref<128x128xf32, #tpu.memory_space<vmem>>, %arg5: memref<128x128xf32, #tpu.memory_space<vmem>>, %arg6: memref<2x1x128xf32, #tpu.memory_space<vmem>>) attributes {dimension_semantics = [#tpu.dimension_semantics<parallel>], iteration_bounds = array<i64: 1>, scalar_prefetch = 0 : i64, scratch_operands = 0 : i64, tpu.core_type = #tpu.core_type<tc>, window_params = [{transform_indices = @transform_0, window_bounds = array<i64: 2, 8, 8>}, {transform_indices = @transform_1, window_bounds = array<i64: 2, 8, 8>}, {pipeline_mode = #tpu.pipeline_mode<synchronous>, transform_indices = @transform_2, window_bounds = array<i64: 8, 128>}, {pipeline_mode = #tpu.pipeline_mode<synchronous>, transform_indices = @transform_3, window_bounds = array<i64: 128, 128>}, {pipeline_mode = #tpu.pipeline_mode<synchronous>, transform_indices = @transform_4, window_bounds = array<i64: 128, 128>}, {transform_indices = @transform_5, window_bounds = array<i64: 2, 1, 128>}]} {
    %c0 = arith.constant 0 : index
    %c0_0 = arith.constant 0 : index
    %c0_1 = arith.constant 0 : index
    %0 = vector.load %arg1[%c0, %c0_0, %c0_1] : memref<2x8x8xf32, #tpu.memory_space<vmem>>, vector<2x8x8xf32>
    %c0_2 = arith.constant 0 : index
    %c0_3 = arith.constant 0 : index
    %c0_4 = arith.constant 0 : index
    %1 = vector.load %arg2[%c0_2, %c0_3, %c0_4] : memref<2x8x8xf32, #tpu.memory_space<vmem>>, vector<2x8x8xf32>
    %2 = arith.mulf %0, %0 : vector<2x8x8xf32>
    %cst = arith.constant dense<0.000000e+00> : vector<2x8xf32>
    %3 = vector.multi_reduction <add>, %2, %cst [2] : vector<2x8x8xf32> to vector<2x8xf32>
    %cst_5 = arith.constant 0.000000e+00 : f32
    %4 = vector.broadcast %cst_5 : f32 to vector<2x8xf32>
    %5 = arith.cmpf ogt, %3, %4 : vector<2x8xf32>
    %6 = arith.extui %5 : vector<2x8xi1> to vector<2x8xi32>
    %7 = arith.sitofp %6 : vector<2x8xi32> to vector<2x8xf32>
    %8 = vector.shape_cast %7 : vector<2x8xf32> to vector<2x1x8xf32>
    %9 = vector.broadcast %8 : vector<2x1x8xf32> to vector<2x8x8xf32>
    %10 = arith.mulf %1, %9 : vector<2x8x8xf32>
    %cst_6 = arith.constant dense<0.000000e+00> : vector<2x8xf32>
    %11 = vector.multi_reduction <add>, %10, %cst_6 [2] : vector<2x8x8xf32> to vector<2x8xf32>
    %12 = vector.shape_cast %11 : vector<2x8xf32> to vector<2x8x1xf32>
    %cst_7 = arith.constant 0.000000e+00 : f32
    %13 = vector.broadcast %cst_7 : f32 to vector<2x8x1xf32>
    %14 = arith.cmpf oeq, %12, %13 : vector<2x8x1xf32>
    %cst_8 = arith.constant 1.000000e+00 : f32
    %15 = vector.broadcast %cst_8 : f32 to vector<2x8x1xf32>
    %16 = arith.select %14, %15, %12 : vector<2x8x1xi1>, vector<2x8x1xf32>
    %17 = tpu.reciprocal %16 : vector<2x8x1xf32> -> vector<2x8x1xf32>
    %18 = vector.broadcast %17 : vector<2x8x1xf32> to vector<2x8x8xf32>
    %19 = arith.mulf %1, %18 : vector<2x8x8xf32>
    %20 = vector.shape_cast %0 : vector<2x8x8xf32> to vector<16x8xf32>
    %c0_9 = arith.constant 0 : index
    %c0_10 = arith.constant 0 : index
    %21 = vector.load %arg3[%c0_9, %c0_10] : memref<8x128xf32, #tpu.memory_space<vmem>>, vector<8x128xf32>
    %cst_11 = arith.constant dense<0.000000e+00> : vector<16x128xf32>
    %22 = tpu.matmul %20, %21, %cst_11 {dimension_numbers = #tpu.dot_dimension_numbers<[1], [0], [0], [1], [0, 0, 1, 1], [], []>} : vector<16x8xf32>, vector<8x128xf32>, vector<16x128xf32> -> vector<16x128xf32>
    %23 = vector.shape_cast %22 : vector<16x128xf32> to vector<2x8x128xf32>
    "tpu.trace_start"() <{level = 10 : i32, message = "bij,bjh->bih"}> : () -> ()
    %cst_12 = arith.constant dense<0.000000e+00> : vector<2x8x128xf32>
    %24 = tpu.matmul %19, %23, %cst_12 {dimension_numbers = #tpu.dot_dimension_numbers<[2], [1], [1], [2], [0, 0, 0, 1, 1, 2], [0], [0]>} : vector<2x8x8xf32>, vector<2x8x128xf32>, vector<2x8x128xf32> -> vector<2x8x128xf32>
    "tpu.trace_stop"() : () -> ()
    %cst_13 = arith.constant 0.000000e+00 : f32
    %25 = vector.broadcast %cst_13 : f32 to vector<2x8x128xf32>
    %26 = arith.maximumf %24, %25 : vector<2x8x128xf32>
    %27 = vector.shape_cast %26 : vector<2x8x128xf32> to vector<16x128xf32>
    %c0_14 = arith.constant 0 : index
    %c0_15 = arith.constant 0 : index
    %28 = vector.load %arg4[%c0_14, %c0_15] : memref<128x128xf32, #tpu.memory_space<vmem>>, vector<128x128xf32>
    %cst_16 = arith.constant dense<0.000000e+00> : vector<16x128xf32>
    %29 = tpu.matmul %27, %28, %cst_16 {dimension_numbers = #tpu.dot_dimension_numbers<[1], [0], [0], [1], [0, 0, 1, 1], [], []>} : vector<16x128xf32>, vector<128x128xf32>, vector<16x128xf32> -> vector<16x128xf32>
    %30 = vector.shape_cast %29 : vector<16x128xf32> to vector<2x8x128xf32>
    %31 = vector.extract_strided_slice %19 {offsets = [0, 0, 0], sizes = [2, 1, 8], strides = [1, 1, 1]} : vector<2x8x8xf32> to vector<2x1x8xf32>
    "tpu.trace_start"() <{level = 10 : i32, message = "bij,bjh->bih"}> : () -> ()
    %cst_17 = arith.constant dense<0.000000e+00> : vector<2x1x128xf32>
    %32 = tpu.matmul %31, %30, %cst_17 {dimension_numbers = #tpu.dot_dimension_numbers<[2], [1], [1], [2], [0, 0, 0, 1, 1, 2], [0], [0]>} : vector<2x1x8xf32>, vector<2x8x128xf32>, vector<2x1x128xf32> -> vector<2x1x128xf32>
    "tpu.trace_stop"() : () -> ()
    %cst_18 = arith.constant 0.000000e+00 : f32
    %33 = vector.broadcast %cst_18 : f32 to vector<2x1x128xf32>
    %34 = arith.maximumf %32, %33 : vector<2x1x128xf32>
    %35 = vector.shape_cast %34 : vector<2x1x128xf32> to vector<2x128xf32>
    %c0_19 = arith.constant 0 : index
    %c0_20 = arith.constant 0 : index
    %36 = vector.load %arg5[%c0_19, %c0_20] : memref<128x128xf32, #tpu.memory_space<vmem>>, vector<128x128xf32>
    %cst_21 = arith.constant dense<0.000000e+00> : vector<2x128xf32>
    %37 = tpu.matmul %35, %36, %cst_21 {dimension_numbers = #tpu.dot_dimension_numbers<[1], [0], [0], [1], [0, 0, 1, 1], [], []>} : vector<2x128xf32>, vector<128x128xf32>, vector<2x128xf32> -> vector<2x128xf32>
    %38 = vector.shape_cast %37 : vector<2x128xf32> to vector<2x1x128xf32>
    %c0_22 = arith.constant 0 : index
    %c0_23 = arith.constant 0 : index
    %c0_24 = arith.constant 0 : index
    %39 = vector.load %arg6[%c0_22, %c0_23, %c0_24] : memref<2x1x128xf32, #tpu.memory_space<vmem>>, vector<2x1x128xf32>
    tpu.vector_store %arg6[%c0_22, %c0_23, %c0_24], %38 {strides = array<i32>} : memref<2x1x128xf32, #tpu.memory_space<vmem>>, vector<2x1x128xf32>,
    return
  }
  func.func @transform_0(%arg0: i32) -> (i32, i32, i32) {
    %c0_i32 = arith.constant 0 : i32
    %c0_i32_0 = arith.constant 0 : i32
    %c0_i32_1 = arith.constant 0 : i32
    return %arg0, %c0_i32, %c0_i32_0 : i32, i32, i32
  }
  func.func @transform_1(%arg0: i32) -> (i32, i32, i32) {
    %c0_i32 = arith.constant 0 : i32
    %c0_i32_0 = arith.constant 0 : i32
    %c0_i32_1 = arith.constant 0 : i32
    return %arg0, %c0_i32, %c0_i32_0 : i32, i32, i32
  }
  func.func @transform_2(%arg0: i32) -> (i32, i32) {
    %c0_i32 = arith.constant 0 : i32
    %c0_i32_0 = arith.constant 0 : i32
    %c0_i32_1 = arith.constant 0 : i32
    return %c0_i32, %c0_i32_0 : i32, i32
  }
  func.func @transform_3(%arg0: i32) -> (i32, i32) {
    %c0_i32 = arith.constant 0 : i32
    %c0_i32_0 = arith.constant 0 : i32
    %c0_i32_1 = arith.constant 0 : i32
    return %c0_i32, %c0_i32_0 : i32, i32
  }
  func.func @transform_4(%arg0: i32) -> (i32, i32) {
    %c0_i32 = arith.constant 0 : i32
    %c0_i32_0 = arith.constant 0 : i32
    %c0_i32_1 = arith.constant 0 : i32
    return %c0_i32, %c0_i32_0 : i32, i32
  }
  func.func @transform_5(%arg0: i32) -> (i32, i32, i32) {
    %c0_i32 = arith.constant 0 : i32
    %c0_i32_0 = arith.constant 0 : i32
    %c0_i32_1 = arith.constant 0 : i32
    return %arg0, %c0_i32, %c0_i32_0 : i32, i32, i32
  }
}

</mosaic_0001>

<bundles_post_ra>
// kernel: tpu_custom_call.1
= control target key start
LH: loop header
LB: loop body
LE: loop exit
PB: predicated region body
PF: predicated region fallthrough
CT: control target
= control target key end

     0   :  { %10 = vsyncpa [#allocation3], 0  ;;  %s1178_s0 = inlined_call_operand.hbm [shape: f32[2,8,8], index: 0, kind: input, shape index: {}]   ;;  %s1179_s1 = inlined_call_operand.hbm [shape: f32[2,8,8], index: 1, kind: input, shape index: {}]   ;;  %s1180_s2 = inlined_call_operand.hbm [shape: f32[8,128], index: 2, kind: input, shape index: {}]   ;;  %s1181_s3 = inlined_call_operand.hbm [shape: f32[128,128], index: 3, kind: input, shape index: {}]   ;;  %s1182_s4 = inlined_call_operand.hbm [shape: f32[128,128], index: 4, kind: input, shape index: {}]   ;;  %s1183_s5 = inlined_call_operand.hbm [shape: f32[2,1,128], index: 5, kind: output, shape index: {}]  }
   0x1   :  { %11 = vsyncpa [#allocation6], 0 }
   0x2   :  { %12 = vsyncpa [#allocation9], 0 }
   0x3   :  { %13 = vsyncpa [#allocation4], 0  ;;  %s1051_s18 = smov [#allocation5]   ;;  %s1052_s20 = smov [#allocation8]  }
   0x4   :  { %s31_s19 = sshll.u32 %s1051_s18, 4  ;;  %s53_s21 = sshll.u32 %s1052_s20, 4  ;;  %s32_s19 = int_to_ptr.vmem [resolvable:$true] %s31_s19  ;;  %s54_s21 = int_to_ptr.vmem [resolvable:$true] %s53_s21 }
   0x5   :  { %s931_s22 = scalar_lea.vmem %s32_s19, 256  ;;  %p936_p1 = scmp.lt.s32.totalorder %s32_s19, %s32_s19 }
   0x6   :  { %p932_p0 = scmp.ne.s32.totalorder %s32_s19, %s931_s22  ;;  %p937_p2 = scmp.lt.s32.totalorder %s931_s22, %s931_s22 }
   0x8   :  { %p938_p3 = por %p937_p2, %p936_p1 }
   0xa   :  { %p939_p4 = pnand %p938_p3, %p932_p0 }
   0xc   :  { %942 = shalt.err (!%p939_p4)
}
   0xd   :  { %s1053_s23 = smov 128   ;;  %s1054_s24 = smov 8  }
   0xe   :  { %37 = dma.hbm_to_vmem [thread:$0]  %s1179_s1, 256, %s32_s19, [#allocation6], %s1053_s23, %s1053_s23, %s1054_s24  }
   0xf   :  { %s951_s27 = scalar_lea.vmem %s54_s21, 2048  ;;  %p956_p6 = scmp.lt.s32.totalorder %s54_s21, %s54_s21 }
  0x10   :  { %p952_p5 = scmp.ne.s32.totalorder %s54_s21, %s951_s27  ;;  %p957_p7 = scmp.lt.s32.totalorder %s951_s27, %s951_s27 }
  0x12   :  { %p958_p8 = por %p957_p7, %p956_p6 }
  0x14   :  { %p959_p9 = pnand %p958_p8, %p952_p5 }
  0x16   :  { %962 = shalt.err (!%p959_p9)
}
  0x17   :  { %59 = dma.hbm_to_vmem [thread:$0]  %s1181_s3, 2048, %s54_s21, [#allocation9], %s1053_s23, %s1053_s23, %s1054_s24  }
  0x18   :  { %s1055_s30 = smov [#allocation2]   ;;  %s1056_s7 = smov [#allocation7]  }
  0x19   :  { %s19_s6 = sshll.u32 %s1055_s30, 4  ;;  %s44_s8 = sshll.u32 %s1056_s7, 4  ;;  %s20_s6 = int_to_ptr.vmem [resolvable:$true] %s19_s6  ;;  %s45_s8 = int_to_ptr.vmem [resolvable:$true] %s44_s8 }
  0x1a   :  { %s971_s1 = scalar_lea.vmem %s20_s6, 256  ;;  %p976_p11 = scmp.lt.s32.totalorder %s20_s6, %s20_s6 }
  0x1b   :  { %p972_p10 = scmp.ne.s32.totalorder %s20_s6, %s971_s1  ;;  %p977_p12 = scmp.lt.s32.totalorder %s971_s1, %s971_s1 }
  0x1d   :  { %p978_p13 = por %p977_p12, %p976_p11 }
  0x1f   :  { %p979_p0 = pnand %p978_p13, %p972_p10 }
  0x21   :  { %982 = shalt.err (!%p979_p0)
}
  0x22   :  { %25 = dma.hbm_to_vmem [thread:$0]  %s1178_s0, 256, %s20_s6, [#allocation3], %s1053_s23, %s1053_s23, %s1054_s24  }
  0x23   :  { %s991_s3 = scalar_lea.vmem %s45_s8, 128  ;;  %p996_p2 = scmp.lt.s32.totalorder %s45_s8, %s45_s8 }
  0x24   :  { %p992_p1 = scmp.ne.s32.totalorder %s45_s8, %s991_s3  ;;  %p997_p3 = scmp.lt.s32.totalorder %s991_s3, %s991_s3 }
  0x26   :  { %p998_p4 = por %p997_p3, %p996_p2 }
  0x28   :  { %p999_p5 = pnand %p998_p4, %p992_p1 }
  0x2a   :  { %1002 = shalt.err (!%p999_p5)
}
  0x2b   :  { %47 = dma.hbm_to_vmem [thread:$0]  %s1180_s2, 128, %s45_s8, [#allocation6]  }
  0x2c   :  { %s1057_s13 = smov [#allocation10]  }
  0x2d   :  { %s65_s14 = sshll.u32 %s1057_s13, 4  ;;  %s66_s14 = int_to_ptr.vmem [resolvable:$true] %s65_s14 }
  0x2e   :  { %s1011_s15 = scalar_lea.vmem %s66_s14, 2048  ;;  %p1016_p7 = scmp.lt.s32.totalorder %s66_s14, %s66_s14 }
  0x2f   :  { %p1012_p6 = scmp.ne.s32.totalorder %s66_s14, %s1011_s15  ;;  %p1017_p8 = scmp.lt.s32.totalorder %s1011_s15, %s1011_s15 }
  0x31   :  { %p1018_p9 = por %p1017_p8, %p1016_p7 }
  0x33   :  { %p1019_p10 = pnand %p1018_p9, %p1012_p6 }
  0x35   :  { %1022 = shalt.err (!%p1019_p10)
}
  0x36   :  { %71 = dma.hbm_to_vmem [thread:$0]  %s1182_s4, 2048, %s66_s14, [#allocation9], %s1053_s23, %s1053_s23, %s1054_s24  }
  0x37   :  { %1043 = dma.done.wait [#allocation3], 256  }
  0x38   :  { %1044 = vsyncadd [#allocation3], 4294967040 }
  0x39   :  { %1045 = dma.done.wait [#allocation6], 384  }
  0x3a   :  { %1046 = vsyncadd [#allocation6], 4294966912 }
  0x3b   :  { %1047 = dma.done.wait [#allocation9], 4096  }
  0x3c   :  { %1048 = vsyncadd [#allocation9], 4294963200  ;;  %v1058_v0 = vmov 0.0   ;;  %v87_v1 = vld [vmem:[#allocation2] sm:$0xff]  ;;  %vm93_vm0 = vcmask 64512   ;;  %v88_v2 = vld [vmem:[#allocation2 + $0x8] sm:$0xff]  ;;  %v108_v8 = vlaneseq }
  0x3d   :  { %821 = vmatprep.subr.mxu0 %v1058_v0  ;;  %v155_v3 = vld [vmem:[#allocation7] sm:$0xff]  ;;  %v91_v4 = vmul.f32 %v87_v1, %v87_v1  ;;  %v92_v5 = vmul.f32 %v88_v2, %v88_v2  ;;  %813 = vmatprep.mubr.msk.f32.mxu1 %vm93_vm0, %v87_v1  ;;  %v89_v14 = vld [vmem:[#allocation5] sm:$0xff]  ;;  %v90_v19 = vld [vmem:[#allocation5 + $0x8] sm:$0xff]  ;;  %vm1059_vm3 = vmmov 0   ;;  %vm118_vm6 = vcmask 1041409   ;;  %s1061_s2 = smov [#allocation11]  }
  0x3e   :  { %811 = vmatprep.subr.mxu1 %v155_v3  ;;  %v109_v9 = vand.u32 127, %v108_v8  ;;  %v1127_v10 = vshrl.u32 %v108_v8, 7  ;;  %823 = vmatprep.mubr.msk.f32.mxu0 %vm1059_vm3, %v1058_v0  ;;  %v400_v25 = vld [vmem:[#allocation8 + $0x78] sm:$0xff]  ;;  %v399_v33 = vld [vmem:[#allocation8 + $0x70] sm:$0xff]  ;;  %v398_v35 = vld [vmem:[#allocation8 + $0x68] sm:$0xff]  ;;  %s741_s4 = sshll.u32 %s1061_s2, 4  ;;  %s742_s4 = int_to_ptr.vmem [resolvable:$true] %s741_s4 }
  0x3f   :  { %812 = vmatpush3.msra.mxu1 %v155_v3  ;;  %v94_v6 = vsel %vm93_vm0, %v91_v4, 0.0  ;;  %v97_v7 = vsel %vm93_vm0, %v92_v5, 0.0  ;;  %v397_v37 = vld [vmem:[#allocation8 + $0x60] sm:$0xff]  ;;  %v396_v38 = vld [vmem:[#allocation8 + $0x58] sm:$0xff]  ;;  %v395_v39 = vld [vmem:[#allocation8 + $0x50] sm:$0xff]  ;;  %s1023_s17 = scalar_lea.vmem %s742_s4, 32  ;;  %p1028_p12 = scmp.lt.s32.totalorder %s742_s4, %s742_s4 }
  0x40   :  { %814 = vmatmul.mubr.msk.f32.vlgmr.msra.gmra.mxu1 %vm93_vm0, %v88_v2  ;;  %816 = vmatprep.subr.mxu1 %v1058_v0  ;;  %v112_v11 = vsub.s32 %v109_v9, %v1127_v10  ;;  %v394_v40 = vld [vmem:[#allocation8 + $0x48] sm:$0xff]  ;;  %v393_v41 = vld [vmem:[#allocation8 + $0x40] sm:$0xff]  ;;  %v392_v42 = vld [vmem:[#allocation8 + $0x38] sm:$0xff]  ;;  %p1024_p11 = scmp.ne.s32.totalorder %s742_s4, %s1023_s17  ;;  %p1029_p13 = scmp.lt.s32.totalorder %s1023_s17, %s1023_s17 }
  0x41   :  { %95 = vadd.xlane.f32.xlu0 %v94_v6  ;;  %818 = vmatprep.mubr.msk.f32.mxu1 %vm1059_vm3, %v1058_v0  ;;  %v391_v43 = vld [vmem:[#allocation8 + $0x30] sm:$0xff]  ;;  %v390_v44 = vld [vmem:[#allocation8 + $0x28] sm:$0xff]  ;;  %v389_v45 = vld [vmem:[#allocation8 + $0x20] sm:$0xff] }
  0x42   :  { %v388_v46 = vld [vmem:[#allocation8 + $0x18] sm:$0xff]  ;;  %v387_v47 = vld [vmem:[#allocation8 + $0x10] sm:$0xff]  ;;  %v386_v48 = vld [vmem:[#allocation8 + $0x8] sm:$0xff]  ;;  %p1030_p0 = por %p1029_p13, %p1028_p12 }
  0x43   :  { %v385_v49 = vld [vmem:[#allocation8] sm:$0xff]  ;;  %v633_v58 = vld [vmem:[#allocation10 + $0x78] sm:$0xff]  ;;  %v632_v59 = vld [vmem:[#allocation10 + $0x70] sm:$0xff] }
  0x44   :  { %v631_v60 = vld [vmem:[#allocation10 + $0x68] sm:$0xff]  ;;  %v630_v61 = vld [vmem:[#allocation10 + $0x60] sm:$0xff]  ;;  %v629_v62 = vld [vmem:[#allocation10 + $0x58] sm:$0xff]  ;;  %p1031_p1 = pnand %p1030_p0, %p1024_p11 }
  0x45   :  { %98 = vadd.xlane.f32.xlu0 %v97_v7  ;;  %v628_v63 = vld [vmem:[#allocation10 + $0x50] sm:$0xff]  ;;  %v627_v1 = vld [vmem:[#allocation10 + $0x48] sm:$0xff]  ;;  %v626_v2 = vld [vmem:[#allocation10 + $0x40] sm:$0xff] }
  0x46   :  { %v625_v3 = vld [vmem:[#allocation10 + $0x38] sm:$0xff]  ;;  %v624_v4 = vld [vmem:[#allocation10 + $0x30] sm:$0xff]  ;;  %v623_v5 = vld [vmem:[#allocation10 + $0x28] sm:$0xff] }
  0x47   :  { %v622_v6 = vld [vmem:[#allocation10 + $0x20] sm:$0xff]  ;;  %v621_v7 = vld [vmem:[#allocation10 + $0x18] sm:$0xff]  ;;  %v620_v8 = vld [vmem:[#allocation10 + $0x10] sm:$0xff] }
  0x48   :  { %v619_v9 = vld [vmem:[#allocation10 + $0x8] sm:$0xff] }
  0xca   :  { %v96_v12 = vpop.xlane.xlu0 %95 }
  0xcb   :  { %vm100_vm1 = vcmp.gt.f32.partialorder %v96_v12, 0.0 }
  0xcc   :  { %v755_v13 = vsel %vm100_vm1, 1.0, %v1058_v0 }
  0xcd   :  { %v113_v15 = vrot.slane %v755_v13, %v112_v11 }
  0xce   :  { %v99_v16 = vpop.xlane.xlu0 %98 }
  0xcf   :  { %vm101_vm2 = vcmp.gt.f32.partialorder %v99_v16, 0.0  ;;  %v139_v17 = vmul.f32 %v113_v15, %v89_v14 }
  0xd0   :  { %v756_v18 = vsel %vm101_vm2, 1.0, %v1058_v0 }
  0xd1   :  { %v117_v20 = vrot.slane %v756_v18, %v112_v11  ;;  %v141_v21 = vsel %vm93_vm0, %v139_v17, 0.0  ;;  %v618_v11 = vld [vmem:[#allocation10] sm:$0xff] }
  0xd2   :  { %142 = vadd.xlane.f32.xlu1 %v141_v21 }
  0xd3   :  { %v140_v22 = vmul.f32 %v117_v20, %v90_v19  ;;  %v1060_v20 = vmov 1966171168  }
  0xd4   :  { %v711_v21 = vunpack.c.l.s4 %v1060_v20 }
  0xd5   :  { %v144_v23 = vsel %vm93_vm0, %v140_v22, 0.0 }
  0xd6   :  { %145 = vadd.xlane.f32.xlu1 %v144_v23  ;;  %v712_v22 = vunpack.c.0.s8 %v711_v21 }
  0xd8   :  { %v715_v23 = vsub.s32 %v712_v22, %v1127_v10 }
 0x100   :  { %v815_v24 = vpop.f32.mrf.mxu1 }
 0x101   :  { %822 = vmatpush3.msra.mxu0 %v815_v24 }
 0x102   :  { %v228_v26 = vpop.f32.mrf.mxu1  ;;  %861 = vmatprep.subr.mxu0 %v1058_v0 }
 0x103   :  { %817 = vmatpush3.msra.mxu1 %v228_v26 }
 0x104   :  { %826 = vmatprep.subr.mxu1 %v400_v25 }
 0x15b   :  { %v143_v27 = vpop.xlane.xlu1 %142 }
 0x15c   :  { %vm147_vm4 = vcmp.eq.f32.partialorder %v143_v27, 0.0 }
 0x15d   :  { %v149_v28 = vsel %vm147_vm4, 1.0, %v143_v27 }
 0x15e   :  { %919 = vrcp.f32 %v149_v28 }
 0x15f   :  { %v146_v29 = vpop.xlane.xlu1 %145 }
 0x160   :  { %vm148_vm5 = vcmp.eq.f32.partialorder %v146_v29, 0.0 }
 0x161   :  { %v150_v30 = vsel %vm148_vm5, 1.0, %v146_v29 }
 0x162   :  { %921 = vrcp.f32 %v150_v30 }
 0x16b   :  { %v920_v31 = vpop.eup %919 }
 0x16c   :  { %v1139_v32 = vmul.f32 %v920_v31, %v89_v14 }
 0x16e   :  { %819 = vmatmul.mubr.msk.f32.vlgmr.msra.gmra.mxu1 %vm93_vm0, %v1139_v32 }
 0x16f   :  { %v922_v34 = vpop.eup %921  ;;  %827 = vmatpush3.msra.mxu1 %v400_v25 }
 0x170   :  { %v1143_v36 = vmul.f32 %v922_v34, %v90_v19  ;;  %828 = vmatprep.subr.mxu1 %v399_v33 }
 0x171   :  { %829 = vmatpush3.msra.mxu1 %v399_v33 }
 0x172   :  { %824 = vmatmul.mubr.msk.f32.vlgmr.msra.gmra.mxu0 %vm93_vm0, %v1143_v36  ;;  %830 = vmatprep.subr.mxu1 %v398_v35 }
 0x173   :  { %831 = vmatpush3.msra.mxu1 %v398_v35  ;;  %863 = vmatprep.mubr.msk.f32.mxu0 %vm1059_vm3, %v1058_v0 }
 0x174   :  { %832 = vmatprep.subr.mxu1 %v397_v37 }
 0x175   :  { %833 = vmatpush3.msra.mxu1 %v397_v37 }
 0x176   :  { %834 = vmatprep.subr.mxu1 %v396_v38 }
 0x177   :  { %835 = vmatpush3.msra.mxu1 %v396_v38 }
 0x178   :  { %836 = vmatprep.subr.mxu1 %v395_v39 }
 0x179   :  { %837 = vmatpush3.msra.mxu1 %v395_v39 }
 0x17a   :  { %838 = vmatprep.subr.mxu1 %v394_v40 }
 0x17b   :  { %839 = vmatpush3.msra.mxu1 %v394_v40 }
 0x17c   :  { %840 = vmatprep.subr.mxu1 %v393_v41 }
 0x17d   :  { %841 = vmatpush3.msra.mxu1 %v393_v41 }
 0x17e   :  { %842 = vmatprep.subr.mxu1 %v392_v42 }
 0x17f   :  { %843 = vmatpush3.msra.mxu1 %v392_v42 }
 0x180   :  { %844 = vmatprep.subr.mxu1 %v391_v43 }
 0x181   :  { %845 = vmatpush3.msra.mxu1 %v391_v43 }
 0x182   :  { %846 = vmatprep.subr.mxu1 %v390_v44 }
 0x183   :  { %847 = vmatpush3.msra.mxu1 %v390_v44 }
 0x184   :  { %848 = vmatprep.subr.mxu1 %v389_v45 }
 0x185   :  { %849 = vmatpush3.msra.mxu1 %v389_v45 }
 0x186   :  { %850 = vmatprep.subr.mxu1 %v388_v46 }
 0x187   :  { %851 = vmatpush3.msra.mxu1 %v388_v46 }
 0x188   :  { %852 = vmatprep.subr.mxu1 %v387_v47 }
 0x189   :  { %853 = vmatpush3.msra.mxu1 %v387_v47 }
 0x18a   :  { %854 = vmatprep.subr.mxu1 %v386_v48 }
 0x18b   :  { %855 = vmatpush3.msra.mxu1 %v386_v48 }
 0x18c   :  { %856 = vmatprep.subr.mxu1 %v385_v49 }
 0x18d   :  { %857 = vmatpush3.msra.mxu1 %v385_v49 }
 0x22e   :  { %v306_v50 = vpop.f32.mrf.mxu1 }
 0x22f   :  { %v383_v51 = vmax.f32 %v306_v50, 0.0 }
 0x230   :  { %v820_v52 = vpop.f32.mrf.mxu1 }
 0x231   :  { %858 = vmatprep.mubr.f32.mxu1 %v383_v51 }
 0x232   :  { %v379_v53 = vpop.f32.mrf.mxu0 }
 0x233   :  { %v384_v54 = vmax.f32 %v379_v53, 0.0 }
 0x234   :  { %v825_v55 = vpop.f32.mrf.mxu0 }
 0x235   :  { %859 = vmatmul.mubr.f32.vlgmr.msra.gmra.mxu1 %v384_v54 }
 0x2f5   :  { %v860_v56 = vpop.f32.mrf.mxu1 }
 0x2f7   :  { %v467_v57 = vpop.f32.mrf.mxu1 }
 0x2f8   :  { %862 = vmatpush3.msra.mxu0 %v467_v57 }
 0x2f9   :  { %864 = vmatmul.mubr.msk.f32.vlgmr.msra.gmra.mxu0 %vm93_vm0, %v1139_v32  ;;  %866 = vmatprep.subr.mxu0 %v1058_v0 }
 0x2fa   :  { %867 = vmatpush3.msra.mxu0 %v860_v56  ;;  %868 = vmatprep.mubr.msk.f32.mxu0 %vm1059_vm3, %v1058_v0 }
 0x2fb   :  { %871 = vmatprep.subr.mxu0 %v1058_v0 }
 0x2fd   :  { %869 = vmatmul.mubr.msk.f32.vlgmr.msra.gmra.mxu0 %vm93_vm0, %v1143_v36 }
 0x2fe   :  { %872 = vmatpush3.msra.mxu0 %v633_v58  ;;  %903 = vmatprep.mubr.msk.f32.mxu0 %vm1059_vm3, %v1058_v0 }
 0x2ff   :  { %873 = vmatprep.subr.mxu0 %v1058_v0 }
 0x300   :  { %874 = vmatpush3.msra.mxu0 %v632_v59 }
 0x301   :  { %875 = vmatprep.subr.mxu0 %v1058_v0 }
 0x302   :  { %876 = vmatpush3.msra.mxu0 %v631_v60 }
 0x303   :  { %877 = vmatprep.subr.mxu0 %v1058_v0 }
 0x304   :  { %878 = vmatpush3.msra.mxu0 %v630_v61 }
 0x305   :  { %879 = vmatprep.subr.mxu0 %v1058_v0 }
 0x306   :  { %880 = vmatpush3.msra.mxu0 %v629_v62 }
 0x307   :  { %881 = vmatprep.subr.mxu0 %v1058_v0 }
 0x308   :  { %882 = vmatpush3.msra.mxu0 %v628_v63 }
 0x309   :  { %883 = vmatprep.subr.mxu0 %v1058_v0 }
 0x30a   :  { %884 = vmatpush3.msra.mxu0 %v627_v1 }
 0x30b   :  { %885 = vmatprep.subr.mxu0 %v1058_v0 }
 0x30c   :  { %886 = vmatpush3.msra.mxu0 %v626_v2 }
 0x30d   :  { %887 = vmatprep.subr.mxu0 %v1058_v0 }
 0x30e   :  { %888 = vmatpush3.msra.mxu0 %v625_v3 }
 0x30f   :  { %889 = vmatprep.subr.mxu0 %v1058_v0 }
 0x310   :  { %890 = vmatpush3.msra.mxu0 %v624_v4 }
 0x311   :  { %891 = vmatprep.subr.mxu0 %v1058_v0 }
 0x312   :  { %892 = vmatpush3.msra.mxu0 %v623_v5 }
 0x313   :  { %893 = vmatprep.subr.mxu0 %v1058_v0 }
 0x314   :  { %894 = vmatpush3.msra.mxu0 %v622_v6 }
 0x315   :  { %895 = vmatprep.subr.mxu0 %v1058_v0 }
 0x316   :  { %896 = vmatpush3.msra.mxu0 %v621_v7 }
 0x317   :  { %897 = vmatprep.subr.mxu0 %v1058_v0 }
 0x318   :  { %898 = vmatpush3.msra.mxu0 %v620_v8 }
 0x319   :  { %899 = vmatprep.subr.mxu0 %v1058_v0 }
 0x31a   :  { %900 = vmatpush3.msra.mxu0 %v619_v9 }
 0x31b   :  { %901 = vmatprep.subr.mxu0 %v1058_v0 }
 0x31c   :  { %902 = vmatpush3.msra.mxu0 %v618_v11 }
 0x3b9   :  { %v542_v12 = vpop.f32.mrf.mxu0 }
 0x3ba   :  { %v616_v17 = vmax.f32 %v542_v12, 0.0 }
 0x3bb   :  { %v865_v13 = vpop.f32.mrf.mxu0 }
 0x3bd   :  { %v612_v14 = vpop.f32.mrf.mxu0 }
 0x3be   :  { %v617_v15 = vmax.f32 %v612_v14, 0.0 }
 0x3bf   :  { %v870_v16 = vpop.f32.mrf.mxu0 }
 0x3c0   :  { %v636_v18 = vrot.slane %v617_v15, 7 }
 0x3c2   :  { %v637_v19 = vsel %vm118_vm6, %v636_v18, %v616_v17 }
 0x3c3   :  { %904 = vmatmul.mubr.f32.vlgmr.msra.gmra.mxu0 %v637_v19 }
 0x483   :  { %v705_v24 = vpop.f32.mrf.mxu0 }
 0x484   :  { %v716_v0 = vrot.slane %v705_v24, %v715_v23 }
 0x485   :  { %v905_v25 = vpop.f32.mrf.mxu0 }
 0x486   :  { %v717_v26 = vcombine.high %v716_v0, %v716_v0  ;;  %763 = vst.sshfl [vmem:[#allocation11] sm:$0x1 pattern:$0x73625140] %v716_v0 }
 0x488   :  { %764 = vst.sshfl [vmem:[#allocation11 + $0x1] sm:$0x1 pattern:$0x73625140] %v717_v26 }
 0x489   :  { %1034 = shalt.err (!%p1031_p1)
}
 0x48a   :  { %s1062_s18 = smov 16   ;;  %s1063_s19 = smov 1  }
 0x48b   :  { %747 = dma.vmem_to_hbm [thread:$0]  %s742_s4, 32, %s1183_s5, [#allocation4], %s1062_s18, %s1062_s18, %s1063_s19  }
 0x48c   :  { %1049 = dma.done.wait [#allocation4], 32  }
 0x48d   :  { %1050 = vsyncadd [#allocation4], 4294967264 }
 0x48e   :  { %751 = vsyncpa [#allocation3], 1 }
 0x48f   :  { %752 = vsyncpa [#allocation6], 1 }
 0x490   :  { %753 = vsyncpa [#allocation9], 1 }
 0x491   :  { %754 = vsyncpa [#allocation4], 1 }

</bundles_post_ra>
